<compile_context>
chip_gen: v5e
topology: v5e:2x2
jax: 0.10.0
libtpu: 0.0.40
codegen_flags: <defaults>
</compile_context>

<pallas_src>
import functools

import jax
import jax.numpy as jnp
from jax.experimental import pallas as pl
from jax.experimental.pallas import tpu as pltpu


def mlp_kernel(x_ref, w1_ref, b1_ref, w2_ref, b2_ref, o_ref, *, matmul_dtype):
    # x arrives in its original dtype (f32); cast to the matmul dtype in VMEM/vregs
    # (VPU) instead of materializing a padded/cast copy in HBM.
    x = x_ref[...].astype(matmul_dtype)
    # hidden = relu(x @ W1 + b1): MXU matmul with f32 accumulation, bias+ReLU on VPU.
    h = jnp.dot(x, w1_ref[...], preferred_element_type=jnp.float32)
    h = jnp.maximum(h + b1_ref[...], 0.0)
    # out = h @ W2 + b2
    y = jnp.dot(h.astype(matmul_dtype), w2_ref[...],
                preferred_element_type=jnp.float32)
    o_ref[...] = (y + b2_ref[...]).astype(o_ref.dtype)


def _round_up(n, m):
    return ((n + m - 1) // m) * m


def prepare_params(w1, b1, w2, b2, matmul_dtype=jnp.bfloat16):
    """One-time parameter prep (do this at init, NOT per forward call).

    Weights are stored [in, out] (transposed vs torch.nn.Linear.weight) and cast to
    the matmul dtype once; biases stay f32 and are reshaped to (1, n) so the kernel
    block equals the full array dims.
    """
    return (w1.astype(matmul_dtype),
            b1.reshape(1, -1).astype(jnp.float32),
            w2.astype(matmul_dtype),
            b2.reshape(1, -1).astype(jnp.float32))


def net_forward(x, params, *, block_batch=1024):
    """relu(x @ W1 + b1) @ W2 + b2, tiled over the batch dimension.

    x:      [batch, n_feature], left unpadded/uncast in HBM (streamed per tile).
    params: output of prepare_params(); weights stay VMEM-resident across steps.
    """
    w1_p, b1_p, w2_p, b2_p = params
    batch, n_feature = x.shape
    n_hidden = w1_p.shape[1]
    n_output = w2_p.shape[1]
    matmul_dtype = w1_p.dtype
    out_dtype = x.dtype

    # Batch tile: sublane-aligned (16 rows for packed bf16, 8 for f32), capped by
    # block_batch and by cdiv(batch, 2) so the grid has >= 2 steps (lets the
    # "parallel" axis shard across both TensorCores on v7x; harmless on v5e/v6e).
    sub = 16 if jnp.dtype(matmul_dtype).itemsize == 2 else 8
    tb = max(min(block_batch, pl.cdiv(batch, 2)), sub)
    tb = _round_up(tb, sub)
    grid = pl.cdiv(batch, tb)  # ragged tail: OOB rows are masked on the output store

    # VMEM budget: resident weights (ideally single-buffered) + double-buffered
    # x/out tiles + f32 hidden activations. Raise the scoped-VMEM limit above the
    # per-generation defaults when needed, but stay under v7x's 64 MiB physical.
    w_bytes = (w1_p.size * w1_p.dtype.itemsize + w2_p.size * w2_p.dtype.itemsize
               + b1_p.size * 4 + b2_p.size * 4)
    stream_bytes = (2 * tb * n_feature * x.dtype.itemsize
                    + 2 * tb * n_output * jnp.dtype(out_dtype).itemsize)
    scratch_bytes = tb * n_hidden * 4
    vmem_limit = int(min(max(2 * (w_bytes + stream_bytes + scratch_bytes), 32 << 20),
                         48 << 20))

    def build_call(single_buffer_weights):
        if single_buffer_weights:
            def const_spec(shape):
                # Constant index_map -> fetched once, stays VMEM-resident; a single
                # buffer halves the resident footprint vs default double-buffering.
                return pl.BlockSpec(shape, lambda i: (0, 0),
                                    pipeline_mode=pl.Buffered(1))
        else:
            def const_spec(shape):
                return pl.BlockSpec(shape, lambda i: (0, 0))

        return pl.pallas_call(
            functools.partial(mlp_kernel, matmul_dtype=matmul_dtype),
            out_shape=jax.ShapeDtypeStruct((batch, n_output), out_dtype),
            grid_spec=pl.GridSpec(
                grid=(grid,),
                in_specs=[
                    # x tile: streamed/pipelined; last block dim == full n_feature
                    # (legal), so no HBM pad/cast copy of x is ever made.
                    pl.BlockSpec((tb, n_feature), lambda i: (i, 0)),
                    const_spec((n_feature, n_hidden)),   # W1: VMEM-resident
                    const_spec((1, n_hidden)),           # b1: VMEM-resident
                    const_spec((n_hidden, n_output)),    # W2: VMEM-resident
                    const_spec((1, n_output)),           # b2: VMEM-resident
                ],
                # Output written unpadded: the narrow masked vst is negligible here
                # and this removes the dominant padded-f32 HBM writeback + post-slice.
                out_specs=pl.BlockSpec((tb, n_output), lambda i: (i, 0)),
            ),
            compiler_params=pltpu.CompilerParams(
                dimension_semantics=("parallel",),       # shard batch tiles across TCs
                vmem_limit_bytes=vmem_limit,
            ),
        )

    try:
        return build_call(True)(x, w1_p, b1_p, w2_p, b2_p)
    except Exception:
        # pl.Buffered(1) not supported by this JAX/Mosaic build -> default buffering.
        return build_call(False)(x, w1_p, b1_p, w2_p, b2_p)


def init_params(key, n_feature, n_hidden, n_output, dtype=jnp.float32):
    # Deterministic init mimicking PyTorch Linear default (uniform +- 1/sqrt(fan_in)).
    k1, k2, k3, k4 = jax.random.split(key, 4)
    bound1 = 1.0 / (n_feature ** 0.5)
    bound2 = 1.0 / (n_hidden ** 0.5)
    w1 = jax.random.uniform(k1, (n_feature, n_hidden), dtype, -bound1, bound1)
    b1 = jax.random.uniform(k2, (n_hidden,), dtype, -bound1, bound1)
    w2 = jax.random.uniform(k3, (n_hidden, n_output), dtype, -bound2, bound2)
    b2 = jax.random.uniform(k4, (n_output,), dtype, -bound2, bound2)
    return w1, b1, w2, b2


if __name__ == "__main__":
    n_feature, n_hidden, n_output = 16, 32, 8
    batch = 300  # not a multiple of the batch tile -> exercises the masked tail path

    key = jax.random.PRNGKey(0)
    kx, kparam = jax.random.split(key)
    x = jax.random.normal(kx, (batch, n_feature), jnp.float32)
    w1, b1, w2, b2 = init_params(kparam, n_feature, n_hidden, n_output)

    # f32 matmul path: exact check against a plain-JAX reference.
    params_f32 = prepare_params(w1, b1, w2, b2, matmul_dtype=jnp.float32)
    out_f32 = net_forward(x, params_f32, block_batch=128)
    jax.block_until_ready(out_f32)
    ref_f32 = jnp.maximum(x @ w1 + b1[None, :], 0.0) @ w2 + b2[None, :]
    assert out_f32.shape == (batch, n_output)
    assert jnp.allclose(out_f32, ref_f32, atol=1e-4, rtol=1e-4)

    # bf16 matmul path (recommended large-batch config on v6e/v7x): compare against
    # a reference that applies the same bf16 casts the kernel does.
    params_bf16 = prepare_params(w1, b1, w2, b2, matmul_dtype=jnp.bfloat16)
    out_bf16 = net_forward(x, params_bf16, block_batch=128)
    jax.block_until_ready(out_bf16)
    h_ref = jnp.maximum(
        jnp.dot(x.astype(jnp.bfloat16), w1.astype(jnp.bfloat16),
                preferred_element_type=jnp.float32) + b1[None, :], 0.0)
    ref_bf16 = jnp.dot(h_ref.astype(jnp.bfloat16), w2.astype(jnp.bfloat16),
                       preferred_element_type=jnp.float32) + b2[None, :]
    assert out_bf16.shape == (batch, n_output)
    assert jnp.allclose(out_bf16, ref_bf16, atol=2e-2, rtol=2e-2)

    print("KERNEL_OK")
</pallas_src>

<mosaic_0001>
module attributes {stable_mosaic.version = 11 : i64} {
  func.func @mlp_kernel(%arg0: i32, %arg1: memref<128x16xf32, #tpu.memory_space<vmem>>, %arg2: memref<16x32xf32, #tpu.memory_space<vmem>>, %arg3: memref<1x32xf32, #tpu.memory_space<vmem>>, %arg4: memref<32x8xf32, #tpu.memory_space<vmem>>, %arg5: memref<1x8xf32, #tpu.memory_space<vmem>>, %arg6: memref<128x8xf32, #tpu.memory_space<vmem>>) attributes {dimension_semantics = [#tpu.dimension_semantics<parallel>], iteration_bounds = array<i64: 3>, scalar_prefetch = 0 : i64, scratch_operands = 0 : i64, tpu.core_type = #tpu.core_type<tc>, window_params = [{transform_indices = @transform_0, window_bounds = array<i64: 128, 16>}, {pipeline_mode = #tpu.pipeline_mode<synchronous>, transform_indices = @transform_1, window_bounds = array<i64: 16, 32>}, {pipeline_mode = #tpu.pipeline_mode<synchronous>, transform_indices = @transform_2, window_bounds = array<i64: 1, 32>}, {pipeline_mode = #tpu.pipeline_mode<synchronous>, transform_indices = @transform_3, window_bounds = array<i64: 32, 8>}, {pipeline_mode = #tpu.pipeline_mode<synchronous>, transform_indices = @transform_4, window_bounds = array<i64: 1, 8>}, {transform_indices = @transform_5, window_bounds = array<i64: 128, 8>}]} {
    %c0 = arith.constant 0 : index
    %c0_0 = arith.constant 0 : index
    %0 = vector.load %arg1[%c0, %c0_0] : memref<128x16xf32, #tpu.memory_space<vmem>>, vector<128x16xf32>
    %c0_1 = arith.constant 0 : index
    %c0_2 = arith.constant 0 : index
    %1 = vector.load %arg2[%c0_1, %c0_2] : memref<16x32xf32, #tpu.memory_space<vmem>>, vector<16x32xf32>
    %cst = arith.constant dense<0.000000e+00> : vector<128x32xf32>
    %2 = tpu.matmul %0, %1, %cst {dimension_numbers = #tpu.dot_dimension_numbers<[1], [0], [0], [1], [0, 0, 1, 1], [], []>} : vector<128x16xf32>, vector<16x32xf32>, vector<128x32xf32> -> vector<128x32xf32>
    %c0_3 = arith.constant 0 : index
    %c0_4 = arith.constant 0 : index
    %3 = vector.load %arg3[%c0_3, %c0_4] : memref<1x32xf32, #tpu.memory_space<vmem>>, vector<1x32xf32>
    %4 = vector.broadcast %3 : vector<1x32xf32> to vector<128x32xf32>
    %5 = arith.addf %2, %4 : vector<128x32xf32>
    %cst_5 = arith.constant 0.000000e+00 : f32
    %6 = vector.broadcast %cst_5 : f32 to vector<128x32xf32>
    %7 = arith.maximumf %5, %6 : vector<128x32xf32>
    %c0_6 = arith.constant 0 : index
    %c0_7 = arith.constant 0 : index
    %8 = vector.load %arg4[%c0_6, %c0_7] : memref<32x8xf32, #tpu.memory_space<vmem>>, vector<32x8xf32>
    %cst_8 = arith.constant dense<0.000000e+00> : vector<128x8xf32>
    %9 = tpu.matmul %7, %8, %cst_8 {dimension_numbers = #tpu.dot_dimension_numbers<[1], [0], [0], [1], [0, 0, 1, 1], [], []>} : vector<128x32xf32>, vector<32x8xf32>, vector<128x8xf32> -> vector<128x8xf32>
    %c0_9 = arith.constant 0 : index
    %c0_10 = arith.constant 0 : index
    %10 = vector.load %arg5[%c0_9, %c0_10] : memref<1x8xf32, #tpu.memory_space<vmem>>, vector<1x8xf32>
    %11 = vector.broadcast %10 : vector<1x8xf32> to vector<128x8xf32>
    %12 = arith.addf %9, %11 : vector<128x8xf32>
    %c0_11 = arith.constant 0 : index
    %c0_12 = arith.constant 0 : index
    %13 = vector.load %arg6[%c0_11, %c0_12] : memref<128x8xf32, #tpu.memory_space<vmem>>, vector<128x8xf32>
    tpu.vector_store %arg6[%c0_11, %c0_12], %12 {strides = array<i32>} : memref<128x8xf32, #tpu.memory_space<vmem>>, vector<128x8xf32>,
    return
  }
  func.func @transform_0(%arg0: i32) -> (i32, i32) {
    %c0_i32 = arith.constant 0 : i32
    %c0_i32_0 = arith.constant 0 : i32
    return %arg0, %c0_i32 : i32, i32
  }
  func.func @transform_1(%arg0: i32) -> (i32, i32) {
    %c0_i32 = arith.constant 0 : i32
    %c0_i32_0 = arith.constant 0 : i32
    %c0_i32_1 = arith.constant 0 : i32
    return %c0_i32, %c0_i32_0 : i32, i32
  }
  func.func @transform_2(%arg0: i32) -> (i32, i32) {
    %c0_i32 = arith.constant 0 : i32
    %c0_i32_0 = arith.constant 0 : i32
    %c0_i32_1 = arith.constant 0 : i32
    return %c0_i32, %c0_i32_0 : i32, i32
  }
  func.func @transform_3(%arg0: i32) -> (i32, i32) {
    %c0_i32 = arith.constant 0 : i32
    %c0_i32_0 = arith.constant 0 : i32
    %c0_i32_1 = arith.constant 0 : i32
    return %c0_i32, %c0_i32_0 : i32, i32
  }
  func.func @transform_4(%arg0: i32) -> (i32, i32) {
    %c0_i32 = arith.constant 0 : i32
    %c0_i32_0 = arith.constant 0 : i32
    %c0_i32_1 = arith.constant 0 : i32
    return %c0_i32, %c0_i32_0 : i32, i32
  }
  func.func @transform_5(%arg0: i32) -> (i32, i32) {
    %c0_i32 = arith.constant 0 : i32
    %c0_i32_0 = arith.constant 0 : i32
    return %arg0, %c0_i32 : i32, i32
  }
}

module attributes {stable_mosaic.version = 11 : i64} {
  func.func @mlp_kernel(%arg0: i32, %arg1: memref<128x16xf32, #tpu.memory_space<vmem>>, %arg2: memref<16x32xf32, #tpu.memory_space<vmem>>, %arg3: memref<1x32xf32, #tpu.memory_space<vmem>>, %arg4: memref<32x8xf32, #tpu.memory_space<vmem>>, %arg5: memref<1x8xf32, #tpu.memory_space<vmem>>, %arg6: memref<128x8xf32, #tpu.memory_space<vmem>>) attributes {dimension_semantics = [#tpu.dimension_semantics<parallel>], iteration_bounds = array<i64: 3>, scalar_prefetch = 0 : i64, scratch_operands = 0 : i64, tpu.core_type = #tpu.core_type<tc>, window_params = [{transform_indices = @transform_0, window_bounds = array<i64: 128, 16>}, {pipeline_mode = #tpu.pipeline_mode<synchronous>, transform_indices = @transform_1, window_bounds = array<i64: 16, 32>}, {pipeline_mode = #tpu.pipeline_mode<synchronous>, transform_indices = @transform_2, window_bounds = array<i64: 1, 32>}, {pipeline_mode = #tpu.pipeline_mode<synchronous>, transform_indices = @transform_3, window_bounds = array<i64: 32, 8>}, {pipeline_mode = #tpu.pipeline_mode<synchronous>, transform_indices = @transform_4, window_bounds = array<i64: 1, 8>}, {transform_indices = @transform_5, window_bounds = array<i64: 128, 8>}]} {
    %c0 = arith.constant 0 : index
    %c0_0 = arith.constant 0 : index
    %0 = vector.load %arg1[%c0, %c0_0] : memref<128x16xf32, #tpu.memory_space<vmem>>, vector<128x16xf32>
    %c0_1 = arith.constant 0 : index
    %c0_2 = arith.constant 0 : index
    %1 = vector.load %arg2[%c0_1, %c0_2] : memref<16x32xf32, #tpu.memory_space<vmem>>, vector<16x32xf32>
    %cst = arith.constant dense<0.000000e+00> : vector<128x32xf32>
    %2 = tpu.matmul %0, %1, %cst {dimension_numbers = #tpu.dot_dimension_numbers<[1], [0], [0], [1], [0, 0, 1, 1], [], []>} : vector<128x16xf32>, vector<16x32xf32>, vector<128x32xf32> -> vector<128x32xf32>
    %c0_3 = arith.constant 0 : index
    %c0_4 = arith.constant 0 : index
    %3 = vector.load %arg3[%c0_3, %c0_4] : memref<1x32xf32, #tpu.memory_space<vmem>>, vector<1x32xf32>
    %4 = vector.broadcast %3 : vector<1x32xf32> to vector<128x32xf32>
    %5 = arith.addf %2, %4 : vector<128x32xf32>
    %cst_5 = arith.constant 0.000000e+00 : f32
    %6 = vector.broadcast %cst_5 : f32 to vector<128x32xf32>
    %7 = arith.maximumf %5, %6 : vector<128x32xf32>
    %c0_6 = arith.constant 0 : index
    %c0_7 = arith.constant 0 : index
    %8 = vector.load %arg4[%c0_6, %c0_7] : memref<32x8xf32, #tpu.memory_space<vmem>>, vector<32x8xf32>
    %cst_8 = arith.constant dense<0.000000e+00> : vector<128x8xf32>
    %9 = tpu.matmul %7, %8, %cst_8 {dimension_numbers = #tpu.dot_dimension_numbers<[1], [0], [0], [1], [0, 0, 1, 1], [], []>} : vector<128x32xf32>, vector<32x8xf32>, vector<128x8xf32> -> vector<128x8xf32>
    %c0_9 = arith.constant 0 : index
    %c0_10 = arith.constant 0 : index
    %10 = vector.load %arg5[%c0_9, %c0_10] : memref<1x8xf32, #tpu.memory_space<vmem>>, vector<1x8xf32>
    %11 = vector.broadcast %10 : vector<1x8xf32> to vector<128x8xf32>
    %12 = arith.addf %9, %11 : vector<128x8xf32>
    %c0_11 = arith.constant 0 : index
    %c0_12 = arith.constant 0 : index
    %13 = vector.load %arg6[%c0_11, %c0_12] : memref<128x8xf32, #tpu.memory_space<vmem>>, vector<128x8xf32>
    tpu.vector_store %arg6[%c0_11, %c0_12], %12 {strides = array<i32>} : memref<128x8xf32, #tpu.memory_space<vmem>>, vector<128x8xf32>,
    return
  }
  func.func @transform_0(%arg0: i32) -> (i32, i32) {
    %c0_i32 = arith.constant 0 : i32
    %c0_i32_0 = arith.constant 0 : i32
    return %arg0, %c0_i32 : i32, i32
  }
  func.func @transform_1(%arg0: i32) -> (i32, i32) {
    %c0_i32 = arith.constant 0 : i32
    %c0_i32_0 = arith.constant 0 : i32
    %c0_i32_1 = arith.constant 0 : i32
    return %c0_i32, %c0_i32_0 : i32, i32
  }
  func.func @transform_2(%arg0: i32) -> (i32, i32) {
    %c0_i32 = arith.constant 0 : i32
    %c0_i32_0 = arith.constant 0 : i32
    %c0_i32_1 = arith.constant 0 : i32
    return %c0_i32, %c0_i32_0 : i32, i32
  }
  func.func @transform_3(%arg0: i32) -> (i32, i32) {
    %c0_i32 = arith.constant 0 : i32
    %c0_i32_0 = arith.constant 0 : i32
    %c0_i32_1 = arith.constant 0 : i32
    return %c0_i32, %c0_i32_0 : i32, i32
  }
  func.func @transform_4(%arg0: i32) -> (i32, i32) {
    %c0_i32 = arith.constant 0 : i32
    %c0_i32_0 = arith.constant 0 : i32
    %c0_i32_1 = arith.constant 0 : i32
    return %c0_i32, %c0_i32_0 : i32, i32
  }
  func.func @transform_5(%arg0: i32) -> (i32, i32) {
    %c0_i32 = arith.constant 0 : i32
    %c0_i32_0 = arith.constant 0 : i32
    return %arg0, %c0_i32 : i32, i32
  }
}

</mosaic_0001>

<bundles_post_ra>
// kernel: tpu_custom_call.1
= control target key start
LH: loop header
LB: loop body
LE: loop exit
PB: predicated region body
PF: predicated region fallthrough
CT: control target
= control target key end

     0   :  { %s1086_s18 = smov 0   ;;  %s1088_s19 = smov 0   ;;  %s1354_s0 = inlined_call_operand.vmem [shape: f32[300,16], index: 0, kind: input, shape index: {}]   ;;  %s1355_s1 = inlined_call_operand.vmem [shape: f32[16,32], index: 1, kind: input, shape index: {}]   ;;  %s1356_s2 = inlined_call_operand.vmem [shape: f32[1,32], index: 2, kind: input, shape index: {}]   ;;  %s1357_s3 = inlined_call_operand.vmem [shape: f32[32,8], index: 3, kind: input, shape index: {}]   ;;  %s1358_s4 = inlined_call_operand.vmem [shape: f32[1,8], index: 4, kind: input, shape index: {}]   ;;  %s1359_s5 = inlined_call_operand.vmem [shape: f32[300,8], index: 5, kind: output, shape index: {}]  }
   0x1   :  { %s1090_s20 = smov 0  }
   0x2 LB: > { %s1099_s21 = sadd.s32 4294967295, %s1022_s20   ;;  %s1101_s22 = sadd.s32 1, %s1022_s20   ;;  %s1022_s20 = sphi %s1090_s20, %s1368_s20   ;;  %s1018_s19 = sphi %s1088_s19, %s1367_s19   ;;  %s1014_s18 = sphi %s1086_s18, %s1366_s18  }
   0x3   : > { %s129_s23 = ssub.s32 %s1022_s20, %s1101_s22  ;;  %s132_s24 = sadd.s32 1, %s1018_s19 }
   0x4   : > { %p130_p0 = scmp.eq.s32.totalorder %s129_s23, 0  ;;  %p142_p1 = scmp.ne.s32.totalorder %s1018_s19, %s1014_s18 }
   0x5   : > { %p143_p2 = scmp.eq.s32.totalorder %s1099_s21, 2  ;;  %p816_p3 = scmp.ge.s32.totalorder %s1022_s20, 1 }
   0x6   : > { %s1109_s25 = scalar_select %p130_p0, %s1018_s19, %s132_s24  }
   0x7   : > { %p1111_p4 = por %p143_p2, %p142_p1  ;;  %p196_p5 = scmp.lt.s32.totalorder %s1022_s20, 4 }
   0x9   : > { %p197_p6 = pnand %p816_p3, %p196_p5 }
   0xa   : > { %s1122_s6 = sshll.u32 (!%p197_p6), %s1099_s21, 4  ;;  %s224_s28 = sand.u32 (!%p197_p6), 1, %s1014_s18  }
   0xb   : > { %200 = sbr.rel (%p197_p6) target bundleno = 454 (0x1c6), region = 40  ;;  %p232_p7 = scmp.lt.s32.totalorder (!%p197_p6), %s1122_s6, 37 }
   0xc   : > { %s817_s29 = sshll.u32 (!%p197_p6), %s224_s28, 7 }
  0x10   : > { %v263_v0 = vld [vmem:[%s1355_s1 + $0x8] sm:$0xff]  ;;  %v262_v1 = vld [vmem:[%s1355_s1] sm:$0xff]  ;;  %s233_s7 = scalar_select %p232_p7, %s1122_s6, 37  ;;  %vm268_vm0 = vcmask 130048   ;;  %v401_v12 = vld [vmem:[%s1357_s3 + $0x18] sm:$0xff]  ;;  %vm406_vm1 = vcmask 261120  }
  0x11   : > { %331 = vmatpush.msra.mxu0 %v263_v0  ;;  %872 = vmatpush.msra.mxu3 %v263_v0  ;;  %v400_v19 = vld [vmem:[%s1357_s3 + $0x10] sm:$0xff]  ;;  %v399_v20 = vld [vmem:[%s1357_s3 + $0x8] sm:$0xff]  ;;  %v398_v21 = vld [vmem:[%s1357_s3] sm:$0xff]  ;;  %vm520_vm2 = vcmask 64512   ;;  %s545_s18 = ssub.s32 (%p1111_p4), 38, %s1122_s6  ;;  %s869_s9 = sshll.u32 (%p1111_p4), %s1099_s21, 7 }
  0x12   : > { %s819_s8 = sshll.u32 %s233_s7, 3  ;;  %467 = vmatpush.msra.mxu1 %v401_v12  ;;  %874 = vmatpush.msra.mxu2 %v401_v12  ;;  %v1178_v22 = vld [vmem:[%s1356_s2] ss:$0 sm:$0xff]  ;;  %p546_p8 = scmp.lt.s32.totalorder (%p1111_p4), %s545_s18, 16 }
  0x13   : > { %332 = vmatpush.msra.mxu0 %v262_v1  ;;  %873 = vmatpush.msra.mxu3 %v262_v1  ;;  %s1129_s11 = scalar_lea.vmem %s1354_s0, %s819_s8  ;;  %s1216_s8 = scalar_lea.vmem [#allocation2], %s817_s29  }
  0x14   : > { %v246_v2 = vld [vmem:[%s1129_s11] sm:$0xff]  ;;  %v247_v3 = vld [vmem:[%s1129_s11 + $0x8] sm:$0xff]  ;;  %v248_v4 = vld [vmem:[%s1129_s11 + $0x10] sm:$0xff]  ;;  %468 = vmatpush.msra.mxu1 %v400_v19  ;;  %875 = vmatpush.msra.mxu2 %v400_v19  ;;  %s1257_s12 = scalar_lea.vmem (%p1111_p4), %s1359_s5, %s869_s9  }
  0x15   : > { %820 = vmatmul.msk.f32.vlgmr.msra.gmra.mxu0 %vm268_vm0, %v246_v2  ;;  %v249_v5 = vld [vmem:[%s1129_s11 + $0x18] sm:$0xff]  ;;  %v250_v6 = vld [vmem:[%s1129_s11 + $0x20] sm:$0xff]  ;;  %v255_v7 = vld [vmem:[%s1129_s11 + $0x48] sm:$0xff] }
  0x16   : > { %829 = vmatmul.msk.f32.vlgmr.msra.gmra.mxu3 %vm268_vm0, %v255_v7  ;;  %v251_v8 = vld [vmem:[%s1129_s11 + $0x28] sm:$0xff]  ;;  %v256_v9 = vld [vmem:[%s1129_s11 + $0x50] sm:$0xff]  ;;  %v257_v11 = vld [vmem:[%s1129_s11 + $0x58] sm:$0xff]  ;;  %469 = vmatpush.msra.mxu1 %v399_v20 }
  0x17   : > { %v252_v10 = vld [vmem:[%s1129_s11 + $0x30] sm:$0xff]  ;;  %v253_v13 = vld [vmem:[%s1129_s11 + $0x38] sm:$0xff]  ;;  %v258_v14 = vld [vmem:[%s1129_s11 + $0x60] sm:$0xff]  ;;  %876 = vmatpush.msra.mxu2 %v399_v20 }
  0x18   : > { %v254_v15 = vld [vmem:[%s1129_s11 + $0x40] sm:$0xff]  ;;  %v259_v16 = vld [vmem:[%s1129_s11 + $0x68] sm:$0xff]  ;;  %v260_v17 = vld [vmem:[%s1129_s11 + $0x70] sm:$0xff]  ;;  %470 = vmatpush.msra.mxu1 %v398_v21 }
  0x19   : > { %v261_v18 = vld [vmem:[%s1129_s11 + $0x78] sm:$0xff]  ;;  %877 = vmatpush.msra.mxu2 %v398_v21  ;;  %v967_v7 = vld [vmem:[%s1358_s4] ss:$0 sm:$0xff] }
  0x1d   : > { %821 = vmatmul.msk.f32.gmra.mxu0 %vm268_vm0, %v247_v3 }
  0x1e   : > { %830 = vmatmul.msk.f32.gmra.mxu3 %vm268_vm0, %v256_v9 }
  0x25   : > { %822 = vmatmul.msk.f32.gmra.mxu0 %vm268_vm0, %v248_v4 }
  0x26   : > { %831 = vmatmul.msk.f32.gmra.mxu3 %vm268_vm0, %v257_v11 }
  0x2d   : > { %823 = vmatmul.msk.f32.gmra.mxu0 %vm268_vm0, %v249_v5 }
  0x2e   : > { %832 = vmatmul.msk.f32.gmra.mxu3 %vm268_vm0, %v258_v14 }
  0x35   : > { %824 = vmatmul.msk.f32.gmra.mxu0 %vm268_vm0, %v250_v6 }
  0x36   : > { %833 = vmatmul.msk.f32.gmra.mxu3 %vm268_vm0, %v259_v16 }
  0x3d   : > { %825 = vmatmul.msk.f32.gmra.mxu0 %vm268_vm0, %v251_v8 }
  0x3e   : > { %834 = vmatmul.msk.f32.gmra.mxu3 %vm268_vm0, %v260_v17 }
  0x45   : > { %826 = vmatmul.msk.f32.gmra.mxu0 %vm268_vm0, %v252_v10 }
  0x46   : > { %835 = vmatmul.msk.f32.gmra.mxu3 %vm268_vm0, %v261_v18 }
  0x4d   : > { %827 = vmatmul.msk.f32.gmra.mxu0 %vm268_vm0, %v253_v13 }
  0x55   : > { %828 = vmatmul.msk.f32.gmra.mxu0 %vm268_vm0, %v254_v15 }
  0x92   : > { %v334_v23 = vpop.f32.mrf.mxu0 }
  0x93   : > { %v335_v24 = vadd.f32 %v1178_v22, %v334_v23 }
  0x95   : > { %v382_v25 = vmax.f32 %v335_v24, 0.0 }
  0x97   : > { %836 = vmatmul.msk.f32.vlgmr.msra.gmra.mxu1 %vm406_vm1, %v382_v25 }
  0x99   : > { %v361_v44 = vpop.f32.mrf.mxu3 }
  0x9a   : > { %v337_v26 = vpop.f32.mrf.mxu0  ;;  %v362_v52 = vadd.f32 %v1178_v22, %v361_v44 }
  0x9b   : > { %v338_v27 = vadd.f32 %v1178_v22, %v337_v26 }
  0x9c   : > { %v391_v53 = vmax.f32 %v362_v52, 0.0 }
  0x9d   : > { %v383_v28 = vmax.f32 %v338_v27, 0.0 }
  0x9f   : > { %837 = vmatmul.msk.f32.gmra.mxu1 %vm406_vm1, %v383_v28 }
  0xa1   : > { %v364_v49 = vpop.f32.mrf.mxu3 }
  0xa2   : > { %v340_v29 = vpop.f32.mrf.mxu0  ;;  %v365_v55 = vadd.f32 %v1178_v22, %v364_v49 }
  0xa3   : > { %v341_v30 = vadd.f32 %v1178_v22, %v340_v29 }
  0xa4   : > { %v392_v56 = vmax.f32 %v365_v55, 0.0 }
  0xa5   : > { %v384_v31 = vmax.f32 %v341_v30, 0.0 }
  0xa7   : > { %838 = vmatmul.msk.f32.gmra.mxu1 %vm406_vm1, %v384_v31 }
  0xa9   : > { %v367_v54 = vpop.f32.mrf.mxu3 }
  0xaa   : > { %v343_v32 = vpop.f32.mrf.mxu0  ;;  %v368_v58 = vadd.f32 %v1178_v22, %v367_v54 }
  0xab   : > { %v344_v33 = vadd.f32 %v1178_v22, %v343_v32 }
  0xac   : > { %v393_v59 = vmax.f32 %v368_v58, 0.0 }
  0xad   : > { %v385_v34 = vmax.f32 %v344_v33, 0.0 }
  0xaf   : > { %839 = vmatmul.msk.f32.gmra.mxu1 %vm406_vm1, %v385_v34 }
  0xb1   : > { %v370_v57 = vpop.f32.mrf.mxu3 }
  0xb2   : > { %v346_v35 = vpop.f32.mrf.mxu0  ;;  %v371_v60 = vadd.f32 %v1178_v22, %v370_v57 }
  0xb3   : > { %v347_v36 = vadd.f32 %v1178_v22, %v346_v35 }
  0xb4   : > { %v394_v62 = vmax.f32 %v371_v60, 0.0 }
  0xb5   : > { %v386_v37 = vmax.f32 %v347_v36, 0.0 }
  0xb7   : > { %840 = vmatmul.msk.f32.gmra.mxu1 %vm406_vm1, %v386_v37 }
  0xb9   : > { %v373_v61 = vpop.f32.mrf.mxu3 }
  0xba   : > { %v349_v38 = vpop.f32.mrf.mxu0  ;;  %v374_v63 = vadd.f32 %v1178_v22, %v373_v61 }
  0xbb   : > { %v350_v39 = vadd.f32 %v1178_v22, %v349_v38 }
  0xbc   : > { %v395_v1 = vmax.f32 %v374_v63, 0.0 }
  0xbd   : > { %v387_v40 = vmax.f32 %v350_v39, 0.0 }
  0xbf   : > { %841 = vmatmul.msk.f32.gmra.mxu1 %vm406_vm1, %v387_v40 }
  0xc1   : > { %v376_v0 = vpop.f32.mrf.mxu3 }
  0xc2   : > { %v352_v41 = vpop.f32.mrf.mxu0  ;;  %v377_v2 = vadd.f32 %v1178_v22, %v376_v0 }
  0xc3   : > { %v353_v42 = vadd.f32 %v1178_v22, %v352_v41 }
  0xc4   : > { %v396_v3 = vmax.f32 %v377_v2, 0.0 }
  0xc5   : > { %v388_v43 = vmax.f32 %v353_v42, 0.0 }
  0xc7   : > { %842 = vmatmul.msk.f32.gmra.mxu1 %vm406_vm1, %v388_v43 }
  0xc9   : > { %v379_v4 = vpop.f32.mrf.mxu3 }
  0xca   : > { %v355_v45 = vpop.f32.mrf.mxu0  ;;  %v380_v5 = vadd.f32 %v1178_v22, %v379_v4 }
  0xcb   : > { %v356_v46 = vadd.f32 %v1178_v22, %v355_v45 }
  0xcc   : > { %v397_v6 = vmax.f32 %v380_v5, 0.0 }
  0xcd   : > { %v389_v47 = vmax.f32 %v356_v46, 0.0 }
  0xcf   : > { %843 = vmatmul.msk.f32.gmra.mxu1 %vm406_vm1, %v389_v47 }
  0xd2   : > { %v358_v48 = vpop.f32.mrf.mxu0 }
  0xd3   : > { %v359_v50 = vadd.f32 %v1178_v22, %v358_v48 }
  0xd5   : > { %v390_v51 = vmax.f32 %v359_v50, 0.0 }
  0xd7   : > { %844 = vmatmul.msk.f32.vlgmr.msra.gmra.mxu2 %vm406_vm1, %v390_v51 }
  0xdf   : > { %845 = vmatmul.msk.f32.gmra.mxu2 %vm406_vm1, %v391_v53 }
  0xe7   : > { %846 = vmatmul.msk.f32.gmra.mxu2 %vm406_vm1, %v392_v56 }
  0xef   : > { %847 = vmatmul.msk.f32.gmra.mxu2 %vm406_vm1, %v393_v59 }
  0xf7   : > { %848 = vmatmul.msk.f32.gmra.mxu2 %vm406_vm1, %v394_v62 }
  0xff   : > { %849 = vmatmul.msk.f32.gmra.mxu2 %vm406_vm1, %v395_v1 }
 0x107   : > { %850 = vmatmul.msk.f32.gmra.mxu2 %vm406_vm1, %v396_v3 }
 0x10f   : > { %851 = vmatmul.msk.f32.gmra.mxu2 %vm406_vm1, %v397_v6 }
 0x114   : > { %v472_v8 = vpop.f32.mrf.mxu1 }
 0x115   : > { %v473_v9 = vadd.f32 %v967_v7, %v472_v8 }
 0x117   : > { %521 = vst.msk [vmem:[%s1216_s8] sm:$0xff] %vm520_vm2, %v473_v9 }
 0x11c   : > { %v475_v10 = vpop.f32.mrf.mxu1 }
 0x11d   : > { %v476_v11 = vadd.f32 %v967_v7, %v475_v10 }
 0x11f   : > { %522 = vst.msk [vmem:[%s1216_s8 + $0x8] sm:$0xff] %vm520_vm2, %v476_v11 }
 0x124   : > { %v478_v12 = vpop.f32.mrf.mxu1 }
 0x125   : > { %v479_v13 = vadd.f32 %v967_v7, %v478_v12 }
 0x127   : > { %523 = vst.msk [vmem:[%s1216_s8 + $0x10] sm:$0xff] %vm520_vm2, %v479_v13 }
 0x12c   : > { %v481_v14 = vpop.f32.mrf.mxu1 }
 0x12d   : > { %v482_v15 = vadd.f32 %v967_v7, %v481_v14 }
 0x12f   : > { %524 = vst.msk [vmem:[%s1216_s8 + $0x18] sm:$0xff] %vm520_vm2, %v482_v15 }
 0x134   : > { %v484_v16 = vpop.f32.mrf.mxu1 }
 0x135   : > { %v485_v17 = vadd.f32 %v967_v7, %v484_v16 }
 0x137   : > { %525 = vst.msk [vmem:[%s1216_s8 + $0x20] sm:$0xff] %vm520_vm2, %v485_v17 }
 0x13c   : > { %v487_v18 = vpop.f32.mrf.mxu1 }
 0x13d   : > { %v488_v19 = vadd.f32 %v967_v7, %v487_v18 }
 0x13f   : > { %526 = vst.msk [vmem:[%s1216_s8 + $0x28] sm:$0xff] %vm520_vm2, %v488_v19 }
 0x144   : > { %v490_v20 = vpop.f32.mrf.mxu1 }
 0x145   : > { %v491_v21 = vadd.f32 %v967_v7, %v490_v20 }
 0x147   : > { %527 = vst.msk [vmem:[%s1216_s8 + $0x30] sm:$0xff] %vm520_vm2, %v491_v21 }
 0x14c   : > { %v493_v22 = vpop.f32.mrf.mxu1 }
 0x14d   : > { %v494_v23 = vadd.f32 %v967_v7, %v493_v22 }
 0x14f   : > { %528 = vst.msk [vmem:[%s1216_s8 + $0x38] sm:$0xff] %vm520_vm2, %v494_v23 }
 0x15a   : > { %v496_v24 = vpop.f32.mrf.mxu2 }
 0x15b   : > { %v497_v25 = vadd.f32 %v967_v7, %v496_v24 }
 0x15d   : > { %529 = vst.msk [vmem:[%s1216_s8 + $0x40] sm:$0xff] %vm520_vm2, %v497_v25 }
 0x162   : > { %v499_v26 = vpop.f32.mrf.mxu2 }
 0x163   : > { %v500_v27 = vadd.f32 %v967_v7, %v499_v26 }
 0x165   : > { %530 = vst.msk [vmem:[%s1216_s8 + $0x48] sm:$0xff] %vm520_vm2, %v500_v27 }
 0x16a   : > { %v502_v28 = vpop.f32.mrf.mxu2 }
 0x16b   : > { %v503_v29 = vadd.f32 %v967_v7, %v502_v28 }
 0x16d   : > { %531 = vst.msk [vmem:[%s1216_s8 + $0x50] sm:$0xff] %vm520_vm2, %v503_v29 }
 0x172   : > { %v505_v30 = vpop.f32.mrf.mxu2 }
 0x173   : > { %v506_v31 = vadd.f32 %v967_v7, %v505_v30 }
 0x175   : > { %532 = vst.msk [vmem:[%s1216_s8 + $0x58] sm:$0xff] %vm520_vm2, %v506_v31 }
 0x17a   : > { %v508_v32 = vpop.f32.mrf.mxu2 }
 0x17b   : > { %v509_v33 = vadd.f32 %v967_v7, %v508_v32 }
 0x17d   : > { %533 = vst.msk [vmem:[%s1216_s8 + $0x60] sm:$0xff] %vm520_vm2, %v509_v33 }
 0x182   : > { %v511_v34 = vpop.f32.mrf.mxu2 }
 0x183   : > { %v512_v35 = vadd.f32 %v967_v7, %v511_v34 }
 0x185   : > { %534 = vst.msk [vmem:[%s1216_s8 + $0x68] sm:$0xff] %vm520_vm2, %v512_v35 }
 0x18a   : > { %v514_v36 = vpop.f32.mrf.mxu2 }
 0x18b   : > { %v515_v37 = vadd.f32 %v967_v7, %v514_v36 }
 0x18d   : > { %535 = vst.msk [vmem:[%s1216_s8 + $0x70] sm:$0xff] %vm520_vm2, %v515_v37 }
 0x191   : > { %543 = sbr.rel (!%p1111_p4) target bundleno = 454 (0x1c6), region = 44 }
 0x192   : > { %v517_v38 = vpop.f32.mrf.mxu2 }
 0x193   : > { %v518_v39 = vadd.f32 %v967_v7, %v517_v38 }
 0x195   : > { %536 = vst.msk [vmem:[%s1216_s8 + $0x78] sm:$0xff] %vm520_vm2, %v518_v39 }
 0x196   : > { %s1370_s18 = smov (!%p546_p8, %s545_s18), 16 }
 0x197   : > { %s854_s13 = sshll.u32 %s1370_s18, 3 }
 0x198   : > { %p857_p9 = scmp.eq.s32.totalorder %s854_s13, 0 }
 0x199   : > { %s1263_s14 = sshrl.u32 (!%p857_p9), %s1370_s18, 4 }
 0x19a   : > { %554 = sbr.rel (%p857_p9) target bundleno = 454 (0x1c6), region = 48  ;;  %p858_p10 = scmp.le.s32.totalorder (!%p857_p9), %s1263_s14, 0 }
 0x19f   : > { %769 = sbr.rel (%p858_p10) target bundleno = 437 (0x1b5), region = 124  ;;  %s1361_s21 = smov (!%p858_p10), %s1257_s12 }
 0x1a0   : > { %s1362_s26 = smov (!%p858_p10), %s1216_s8  ;;  %s1272_s6 = smov (!%p858_p10), 0  }
 0x1a1   : > { %s1274_s15 = smov (!%p858_p10), 0  }
 0x1a4 LB: >> { %v647_v40 = vld [vmem:[%s1030_s26] sm:$0xff]  ;;  %v649_v41 = vld [vmem:[%s1030_s26 + $0x8] sm:$0xff]  ;;  %v651_v42 = vld [vmem:[%s1030_s26 + $0x10] sm:$0xff]  ;;  %s679_s16 = sadd.s32 1, %s1034_s6  ;;  %s641_s15 = sadd.s32 1, %s1038_s15   ;;  %s1038_s15 = sphi %s1274_s15, %s641_s15   ;;  %s1034_s6 = sphi %s1272_s6, %s1365_s6   ;;  %s1030_s26 = sphi %s1362_s26, %s1364_s26   ;;  %s1026_s21 = sphi %s1361_s21, %s1363_s21  }
 0x1a5   : >> { %648 = vst [vmem:[%s1026_s21] sm:$0xff] %v647_v40  ;;  %v653_v43 = vld [vmem:[%s1030_s26 + $0x18] sm:$0xff]  ;;  %p680_p11 = scmp.ge.s32.totalorder %s679_s16, %s1263_s14  ;;  %v655_v44 = vld [vmem:[%s1030_s26 + $0x20] sm:$0xff]  ;;  %v657_v45 = vld [vmem:[%s1030_s26 + $0x28] sm:$0xff]  ;;  %p640_p12 = scmp.ge.s32.totalorder %s641_s15, %s1263_s14 }
 0x1a6   : >> { %650 = vst [vmem:[%s1026_s21 + $0x8] sm:$0xff] %v649_v41  ;;  %v659_v46 = vld [vmem:[%s1030_s26 + $0x30] sm:$0xff]  ;;  %v661_v47 = vld [vmem:[%s1030_s26 + $0x38] sm:$0xff]  ;;  %v663_v48 = vld [vmem:[%s1030_s26 + $0x40] sm:$0xff] }
 0x1a7   : >> { %652 = vst [vmem:[%s1026_s21 + $0x10] sm:$0xff] %v651_v42  ;;  %s1372_s16 = smov (%p680_p11, %s679_s16), 0  ;;  %v665_v49 = vld [vmem:[%s1030_s26 + $0x48] sm:$0xff]  ;;  %v667_v50 = vld [vmem:[%s1030_s26 + $0x50] sm:$0xff]  ;;  %v669_v51 = vld [vmem:[%s1030_s26 + $0x58] sm:$0xff] }
 0x1a8   : >> { %654 = vst [vmem:[%s1026_s21 + $0x18] sm:$0xff] %v653_v43  ;;  %s859_s17 = sshll.u32 %s1372_s16, 7  ;;  %v671_v52 = vld [vmem:[%s1030_s26 + $0x60] sm:$0xff]  ;;  %v673_v53 = vld [vmem:[%s1030_s26 + $0x68] sm:$0xff]  ;;  %v675_v54 = vld [vmem:[%s1030_s26 + $0x70] sm:$0xff]  ;;  %s1365_s6 = smov %s1372_s16 }
 0x1a9   : >> { %656 = vst [vmem:[%s1026_s21 + $0x20] sm:$0xff] %v655_v44  ;;  %s684_s20 = scalar_lea.vmem %s1216_s8, %s859_s17 [#allocation2]   ;;  %s685_s23 = scalar_lea.vmem %s1257_s12, %s859_s17   ;;  %v677_v55 = vld [vmem:[%s1030_s26 + $0x78] sm:$0xff] }
 0x1aa   : >> { %658 = vst [vmem:[%s1026_s21 + $0x28] sm:$0xff] %v657_v45  ;;  %s1364_s26 = smov %s684_s20 }
 0x1ab   : >> { %660 = vst [vmem:[%s1026_s21 + $0x30] sm:$0xff] %v659_v46 }
 0x1ac   : >> { %662 = vst [vmem:[%s1026_s21 + $0x38] sm:$0xff] %v661_v47 }
 0x1ad   : >> { %664 = vst [vmem:[%s1026_s21 + $0x40] sm:$0xff] %v663_v48 }
 0x1ae   : >> { %666 = vst [vmem:[%s1026_s21 + $0x48] sm:$0xff] %v665_v49 }
 0x1af   : >> { %668 = vst [vmem:[%s1026_s21 + $0x50] sm:$0xff] %v667_v50 }
 0x1b0   : >> { %670 = vst [vmem:[%s1026_s21 + $0x58] sm:$0xff] %v669_v51  ;;  %643 = sbr.rel (!%p640_p12) target bundleno = 420 (0x1a4), region = 130 }
 0x1b1   : >> { %672 = vst [vmem:[%s1026_s21 + $0x60] sm:$0xff] %v671_v52 }
 0x1b2   : >> { %674 = vst [vmem:[%s1026_s21 + $0x68] sm:$0xff] %v673_v53 }
 0x1b3   : >> { %676 = vst [vmem:[%s1026_s21 + $0x70] sm:$0xff] %v675_v54 }
 0x1b4   : >> { %678 = vst [vmem:[%s1026_s21 + $0x78] sm:$0xff] %v677_v55  ;;  %s1363_s21 = smov %s685_s23 }
 0x1b5 PF: > { %s1336_s24 = sand.u32 15, %s1370_s18   ;;  %s870_s27 = sshll.u32 %s1263_s14, 7 }
 0x1b6   : > { %s690_s28 = scalar_lea.vmem %s1216_s8, %s870_s27 [#allocation2]   ;;  %s692_s29 = scalar_lea.vmem %s1257_s12, %s870_s27  }
 0x1b7   : > { %p864_p13 = scmp.le.s32.totalorder %s1336_s24, 0 }
 0x1b8   : > { %s1040_s30 = smov (!%p864_p13), %s692_s29   ;;  %s1044_s7 = smov (!%p864_p13), %s690_s28  }
 0x1b9   : > { %783 = sbr.rel (%p864_p13) target bundleno = 454 (0x1c6), region = 135  ;;  %s1048_s9 = smov (!%p864_p13), 0  }
 0x1ba   : > { %s1052_s10 = smov (!%p864_p13), 0  }
 0x1be LB: >> { %v702_v56 = vld [vmem:[%s1046_s7] sm:$0xff]  ;;  %s704_s18 = sadd.s32 1, %s1050_s9  ;;  %s696_s10 = sadd.s32 1, %s1054_s10   ;;  %s1054_s10 = sphi %s1052_s10, %s696_s10   ;;  %s1050_s9 = sphi %s1048_s9, %s1049_s9   ;;  %s1046_s7 = sphi %s1044_s7, %s709_s7   ;;  %s1042_s30 = sphi %s1040_s30, %s710_s30  }
 0x1bf   : >> { %703 = vst [vmem:[%s1042_s30] sm:$0xff] %v702_v56  ;;  %p705_p0 = scmp.ge.s32.totalorder %s704_s18, %s1336_s24  ;;  %p695_p1 = scmp.ge.s32.totalorder %s696_s10, %s1336_s24 }
 0x1c1   : >> { %s1374_s18 = smov (%p705_p0, %s704_s18), 0  ;;  %698 = sbr.rel (!%p695_p1) target bundleno = 446 (0x1be), region = 141 }
 0x1c2   : >> { %s865_s8 = sshll.u32 %s1374_s18, 3  ;;  %s1049_s9 = smov %s1374_s18  }
 0x1c3   : >> { %s709_s7 = scalar_lea.vmem %s690_s28, %s865_s8 [#allocation2]   ;;  %s710_s30 = scalar_lea.vmem %s692_s29, %s865_s8  }
 0x1c6 PF: > { %p12_p2 = scmp.ge.s32.totalorder %s1101_s22, 5   ;;  %s1366_s18 = smov %s1018_s19 }
 0x1c7   : > { %s1367_s19 = smov %s1109_s25  ;;  %s1368_s20 = smov %s1101_s22 }
 0x1c8   :  { %14 = sbr.rel (!%p12_p2) target bundleno = 2 (0x2), region = 152 }

// kernel: tpu_custom_call.1
= control target key start
LH: loop header
LB: loop body
LE: loop exit
PB: predicated region body
PF: predicated region fallthrough
CT: control target
= control target key end

     0   :  { %s1086_s18 = smov 0   ;;  %s1088_s19 = smov 0   ;;  %s1354_s0 = inlined_call_operand.vmem [shape: f32[300,16], index: 0, kind: input, shape index: {}]   ;;  %s1355_s1 = inlined_call_operand.vmem [shape: f32[16,32], index: 1, kind: input, shape index: {}]   ;;  %s1356_s2 = inlined_call_operand.vmem [shape: f32[1,32], index: 2, kind: input, shape index: {}]   ;;  %s1357_s3 = inlined_call_operand.vmem [shape: f32[32,8], index: 3, kind: input, shape index: {}]   ;;  %s1358_s4 = inlined_call_operand.vmem [shape: f32[1,8], index: 4, kind: input, shape index: {}]   ;;  %s1359_s5 = inlined_call_operand.vmem [shape: f32[300,8], index: 5, kind: output, shape index: {}]  }
   0x1   :  { %s1090_s20 = smov 0  }
   0x2 LB: > { %s1099_s21 = sadd.s32 4294967295, %s1022_s20   ;;  %s1101_s22 = sadd.s32 1, %s1022_s20   ;;  %s1022_s20 = sphi %s1090_s20, %s1368_s20   ;;  %s1018_s19 = sphi %s1088_s19, %s1367_s19   ;;  %s1014_s18 = sphi %s1086_s18, %s1366_s18  }
   0x3   : > { %s129_s23 = ssub.s32 %s1022_s20, %s1101_s22  ;;  %s132_s24 = sadd.s32 1, %s1018_s19 }
   0x4   : > { %p130_p0 = scmp.eq.s32.totalorder %s129_s23, 0  ;;  %p142_p1 = scmp.ne.s32.totalorder %s1018_s19, %s1014_s18 }
   0x5   : > { %p143_p2 = scmp.eq.s32.totalorder %s1099_s21, 2  ;;  %p816_p3 = scmp.ge.s32.totalorder %s1022_s20, 1 }
   0x6   : > { %s1109_s25 = scalar_select %p130_p0, %s1018_s19, %s132_s24  }
   0x7   : > { %p1111_p4 = por %p143_p2, %p142_p1  ;;  %p196_p5 = scmp.lt.s32.totalorder %s1022_s20, 4 }
   0x9   : > { %p197_p6 = pnand %p816_p3, %p196_p5 }
   0xa   : > { %s1122_s6 = sshll.u32 (!%p197_p6), %s1099_s21, 4  ;;  %s224_s28 = sand.u32 (!%p197_p6), 1, %s1014_s18  }
   0xb   : > { %200 = sbr.rel (%p197_p6) target bundleno = 454 (0x1c6), region = 40  ;;  %p232_p7 = scmp.lt.s32.totalorder (!%p197_p6), %s1122_s6, 37 }
   0xc   : > { %s817_s29 = sshll.u32 (!%p197_p6), %s224_s28, 7 }
  0x10   : > { %v263_v0 = vld [vmem:[%s1355_s1 + $0x8] sm:$0xff]  ;;  %v262_v1 = vld [vmem:[%s1355_s1] sm:$0xff]  ;;  %s233_s7 = scalar_select %p232_p7, %s1122_s6, 37  ;;  %vm268_vm0 = vcmask 130048   ;;  %v401_v12 = vld [vmem:[%s1357_s3 + $0x18] sm:$0xff]  ;;  %vm406_vm1 = vcmask 261120  }
  0x11   : > { %331 = vmatpush.msra.mxu0 %v263_v0  ;;  %872 = vmatpush.msra.mxu3 %v263_v0  ;;  %v400_v19 = vld [vmem:[%s1357_s3 + $0x10] sm:$0xff]  ;;  %v399_v20 = vld [vmem:[%s1357_s3 + $0x8] sm:$0xff]  ;;  %v398_v21 = vld [vmem:[%s1357_s3] sm:$0xff]  ;;  %vm520_vm2 = vcmask 64512   ;;  %s545_s18 = ssub.s32 (%p1111_p4), 38, %s1122_s6  ;;  %s869_s9 = sshll.u32 (%p1111_p4), %s1099_s21, 7 }
  0x12   : > { %s819_s8 = sshll.u32 %s233_s7, 3  ;;  %467 = vmatpush.msra.mxu1 %v401_v12  ;;  %874 = vmatpush.msra.mxu2 %v401_v12  ;;  %v1178_v22 = vld [vmem:[%s1356_s2] ss:$0 sm:$0xff]  ;;  %p546_p8 = scmp.lt.s32.totalorder (%p1111_p4), %s545_s18, 16 }
  0x13   : > { %332 = vmatpush.msra.mxu0 %v262_v1  ;;  %873 = vmatpush.msra.mxu3 %v262_v1  ;;  %s1129_s11 = scalar_lea.vmem %s1354_s0, %s819_s8  ;;  %s1216_s8 = scalar_lea.vmem [#allocation2], %s817_s29  }
  0x14   : > { %v246_v2 = vld [vmem:[%s1129_s11] sm:$0xff]  ;;  %v247_v3 = vld [vmem:[%s1129_s11 + $0x8] sm:$0xff]  ;;  %v248_v4 = vld [vmem:[%s1129_s11 + $0x10] sm:$0xff]  ;;  %468 = vmatpush.msra.mxu1 %v400_v19  ;;  %875 = vmatpush.msra.mxu2 %v400_v19  ;;  %s1257_s12 = scalar_lea.vmem (%p1111_p4), %s1359_s5, %s869_s9  }
  0x15   : > { %820 = vmatmul.msk.f32.vlgmr.msra.gmra.mxu0 %vm268_vm0, %v246_v2  ;;  %v249_v5 = vld [vmem:[%s1129_s11 + $0x18] sm:$0xff]  ;;  %v250_v6 = vld [vmem:[%s1129_s11 + $0x20] sm:$0xff]  ;;  %v255_v7 = vld [vmem:[%s1129_s11 + $0x48] sm:$0xff] }
  0x16   : > { %829 = vmatmul.msk.f32.vlgmr.msra.gmra.mxu3 %vm268_vm0, %v255_v7  ;;  %v251_v8 = vld [vmem:[%s1129_s11 + $0x28] sm:$0xff]  ;;  %v256_v9 = vld [vmem:[%s1129_s11 + $0x50] sm:$0xff]  ;;  %v257_v11 = vld [vmem:[%s1129_s11 + $0x58] sm:$0xff]  ;;  %469 = vmatpush.msra.mxu1 %v399_v20 }
  0x17   : > { %v252_v10 = vld [vmem:[%s1129_s11 + $0x30] sm:$0xff]  ;;  %v253_v13 = vld [vmem:[%s1129_s11 + $0x38] sm:$0xff]  ;;  %v258_v14 = vld [vmem:[%s1129_s11 + $0x60] sm:$0xff]  ;;  %876 = vmatpush.msra.mxu2 %v399_v20 }
  0x18   : > { %v254_v15 = vld [vmem:[%s1129_s11 + $0x40] sm:$0xff]  ;;  %v259_v16 = vld [vmem:[%s1129_s11 + $0x68] sm:$0xff]  ;;  %v260_v17 = vld [vmem:[%s1129_s11 + $0x70] sm:$0xff]  ;;  %470 = vmatpush.msra.mxu1 %v398_v21 }
  0x19   : > { %v261_v18 = vld [vmem:[%s1129_s11 + $0x78] sm:$0xff]  ;;  %877 = vmatpush.msra.mxu2 %v398_v21  ;;  %v967_v7 = vld [vmem:[%s1358_s4] ss:$0 sm:$0xff] }
  0x1d   : > { %821 = vmatmul.msk.f32.gmra.mxu0 %vm268_vm0, %v247_v3 }
  0x1e   : > { %830 = vmatmul.msk.f32.gmra.mxu3 %vm268_vm0, %v256_v9 }
  0x25   : > { %822 = vmatmul.msk.f32.gmra.mxu0 %vm268_vm0, %v248_v4 }
  0x26   : > { %831 = vmatmul.msk.f32.gmra.mxu3 %vm268_vm0, %v257_v11 }
  0x2d   : > { %823 = vmatmul.msk.f32.gmra.mxu0 %vm268_vm0, %v249_v5 }
  0x2e   : > { %832 = vmatmul.msk.f32.gmra.mxu3 %vm268_vm0, %v258_v14 }
  0x35   : > { %824 = vmatmul.msk.f32.gmra.mxu0 %vm268_vm0, %v250_v6 }
  0x36   : > { %833 = vmatmul.msk.f32.gmra.mxu3 %vm268_vm0, %v259_v16 }
  0x3d   : > { %825 = vmatmul.msk.f32.gmra.mxu0 %vm268_vm0, %v251_v8 }
  0x3e   : > { %834 = vmatmul.msk.f32.gmra.mxu3 %vm268_vm0, %v260_v17 }
  0x45   : > { %826 = vmatmul.msk.f32.gmra.mxu0 %vm268_vm0, %v252_v10 }
  0x46   : > { %835 = vmatmul.msk.f32.gmra.mxu3 %vm268_vm0, %v261_v18 }
  0x4d   : > { %827 = vmatmul.msk.f32.gmra.mxu0 %vm268_vm0, %v253_v13 }
  0x55   : > { %828 = vmatmul.msk.f32.gmra.mxu0 %vm268_vm0, %v254_v15 }
  0x92   : > { %v334_v23 = vpop.f32.mrf.mxu0 }
  0x93   : > { %v335_v24 = vadd.f32 %v1178_v22, %v334_v23 }
  0x95   : > { %v382_v25 = vmax.f32 %v335_v24, 0.0 }
  0x97   : > { %836 = vmatmul.msk.f32.vlgmr.msra.gmra.mxu1 %vm406_vm1, %v382_v25 }
  0x99   : > { %v361_v44 = vpop.f32.mrf.mxu3 }
  0x9a   : > { %v337_v26 = vpop.f32.mrf.mxu0  ;;  %v362_v52 = vadd.f32 %v1178_v22, %v361_v44 }
  0x9b   : > { %v338_v27 = vadd.f32 %v1178_v22, %v337_v26 }
  0x9c   : > { %v391_v53 = vmax.f32 %v362_v52, 0.0 }
  0x9d   : > { %v383_v28 = vmax.f32 %v338_v27, 0.0 }
  0x9f   : > { %837 = vmatmul.msk.f32.gmra.mxu1 %vm406_vm1, %v383_v28 }
  0xa1   : > { %v364_v49 = vpop.f32.mrf.mxu3 }
  0xa2   : > { %v340_v29 = vpop.f32.mrf.mxu0  ;;  %v365_v55 = vadd.f32 %v1178_v22, %v364_v49 }
  0xa3   : > { %v341_v30 = vadd.f32 %v1178_v22, %v340_v29 }
  0xa4   : > { %v392_v56 = vmax.f32 %v365_v55, 0.0 }
  0xa5   : > { %v384_v31 = vmax.f32 %v341_v30, 0.0 }
  0xa7   : > { %838 = vmatmul.msk.f32.gmra.mxu1 %vm406_vm1, %v384_v31 }
  0xa9   : > { %v367_v54 = vpop.f32.mrf.mxu3 }
  0xaa   : > { %v343_v32 = vpop.f32.mrf.mxu0  ;;  %v368_v58 = vadd.f32 %v1178_v22, %v367_v54 }
  0xab   : > { %v344_v33 = vadd.f32 %v1178_v22, %v343_v32 }
  0xac   : > { %v393_v59 = vmax.f32 %v368_v58, 0.0 }
  0xad   : > { %v385_v34 = vmax.f32 %v344_v33, 0.0 }
  0xaf   : > { %839 = vmatmul.msk.f32.gmra.mxu1 %vm406_vm1, %v385_v34 }
  0xb1   : > { %v370_v57 = vpop.f32.mrf.mxu3 }
  0xb2   : > { %v346_v35 = vpop.f32.mrf.mxu0  ;;  %v371_v60 = vadd.f32 %v1178_v22, %v370_v57 }
  0xb3   : > { %v347_v36 = vadd.f32 %v1178_v22, %v346_v35 }
  0xb4   : > { %v394_v62 = vmax.f32 %v371_v60, 0.0 }
  0xb5   : > { %v386_v37 = vmax.f32 %v347_v36, 0.0 }
  0xb7   : > { %840 = vmatmul.msk.f32.gmra.mxu1 %vm406_vm1, %v386_v37 }
  0xb9   : > { %v373_v61 = vpop.f32.mrf.mxu3 }
  0xba   : > { %v349_v38 = vpop.f32.mrf.mxu0  ;;  %v374_v63 = vadd.f32 %v1178_v22, %v373_v61 }
  0xbb   : > { %v350_v39 = vadd.f32 %v1178_v22, %v349_v38 }
  0xbc   : > { %v395_v1 = vmax.f32 %v374_v63, 0.0 }
  0xbd   : > { %v387_v40 = vmax.f32 %v350_v39, 0.0 }
  0xbf   : > { %841 = vmatmul.msk.f32.gmra.mxu1 %vm406_vm1, %v387_v40 }
  0xc1   : > { %v376_v0 = vpop.f32.mrf.mxu3 }
  0xc2   : > { %v352_v41 = vpop.f32.mrf.mxu0  ;;  %v377_v2 = vadd.f32 %v1178_v22, %v376_v0 }
  0xc3   : > { %v353_v42 = vadd.f32 %v1178_v22, %v352_v41 }
  0xc4   : > { %v396_v3 = vmax.f32 %v377_v2, 0.0 }
  0xc5   : > { %v388_v43 = vmax.f32 %v353_v42, 0.0 }
  0xc7   : > { %842 = vmatmul.msk.f32.gmra.mxu1 %vm406_vm1, %v388_v43 }
  0xc9   : > { %v379_v4 = vpop.f32.mrf.mxu3 }
  0xca   : > { %v355_v45 = vpop.f32.mrf.mxu0  ;;  %v380_v5 = vadd.f32 %v1178_v22, %v379_v4 }
  0xcb   : > { %v356_v46 = vadd.f32 %v1178_v22, %v355_v45 }
  0xcc   : > { %v397_v6 = vmax.f32 %v380_v5, 0.0 }
  0xcd   : > { %v389_v47 = vmax.f32 %v356_v46, 0.0 }
  0xcf   : > { %843 = vmatmul.msk.f32.gmra.mxu1 %vm406_vm1, %v389_v47 }
  0xd2   : > { %v358_v48 = vpop.f32.mrf.mxu0 }
  0xd3   : > { %v359_v50 = vadd.f32 %v1178_v22, %v358_v48 }
  0xd5   : > { %v390_v51 = vmax.f32 %v359_v50, 0.0 }
  0xd7   : > { %844 = vmatmul.msk.f32.vlgmr.msra.gmra.mxu2 %vm406_vm1, %v390_v51 }
  0xdf   : > { %845 = vmatmul.msk.f32.gmra.mxu2 %vm406_vm1, %v391_v53 }
  0xe7   : > { %846 = vmatmul.msk.f32.gmra.mxu2 %vm406_vm1, %v392_v56 }
  0xef   : > { %847 = vmatmul.msk.f32.gmra.mxu2 %vm406_vm1, %v393_v59 }
  0xf7   : > { %848 = vmatmul.msk.f32.gmra.mxu2 %vm406_vm1, %v394_v62 }
  0xff   : > { %849 = vmatmul.msk.f32.gmra.mxu2 %vm406_vm1, %v395_v1 }
 0x107   : > { %850 = vmatmul.msk.f32.gmra.mxu2 %vm406_vm1, %v396_v3 }
 0x10f   : > { %851 = vmatmul.msk.f32.gmra.mxu2 %vm406_vm1, %v397_v6 }
 0x114   : > { %v472_v8 = vpop.f32.mrf.mxu1 }
 0x115   : > { %v473_v9 = vadd.f32 %v967_v7, %v472_v8 }
 0x117   : > { %521 = vst.msk [vmem:[%s1216_s8] sm:$0xff] %vm520_vm2, %v473_v9 }
 0x11c   : > { %v475_v10 = vpop.f32.mrf.mxu1 }
 0x11d   : > { %v476_v11 = vadd.f32 %v967_v7, %v475_v10 }
 0x11f   : > { %522 = vst.msk [vmem:[%s1216_s8 + $0x8] sm:$0xff] %vm520_vm2, %v476_v11 }
 0x124   : > { %v478_v12 = vpop.f32.mrf.mxu1 }
 0x125   : > { %v479_v13 = vadd.f32 %v967_v7, %v478_v12 }
 0x127   : > { %523 = vst.msk [vmem:[%s1216_s8 + $0x10] sm:$0xff] %vm520_vm2, %v479_v13 }
 0x12c   : > { %v481_v14 = vpop.f32.mrf.mxu1 }
 0x12d   : > { %v482_v15 = vadd.f32 %v967_v7, %v481_v14 }
 0x12f   : > { %524 = vst.msk [vmem:[%s1216_s8 + $0x18] sm:$0xff] %vm520_vm2, %v482_v15 }
 0x134   : > { %v484_v16 = vpop.f32.mrf.mxu1 }
 0x135   : > { %v485_v17 = vadd.f32 %v967_v7, %v484_v16 }
 0x137   : > { %525 = vst.msk [vmem:[%s1216_s8 + $0x20] sm:$0xff] %vm520_vm2, %v485_v17 }
 0x13c   : > { %v487_v18 = vpop.f32.mrf.mxu1 }
 0x13d   : > { %v488_v19 = vadd.f32 %v967_v7, %v487_v18 }
 0x13f   : > { %526 = vst.msk [vmem:[%s1216_s8 + $0x28] sm:$0xff] %vm520_vm2, %v488_v19 }
 0x144   : > { %v490_v20 = vpop.f32.mrf.mxu1 }
 0x145   : > { %v491_v21 = vadd.f32 %v967_v7, %v490_v20 }
 0x147   : > { %527 = vst.msk [vmem:[%s1216_s8 + $0x30] sm:$0xff] %vm520_vm2, %v491_v21 }
 0x14c   : > { %v493_v22 = vpop.f32.mrf.mxu1 }
 0x14d   : > { %v494_v23 = vadd.f32 %v967_v7, %v493_v22 }
 0x14f   : > { %528 = vst.msk [vmem:[%s1216_s8 + $0x38] sm:$0xff] %vm520_vm2, %v494_v23 }
 0x15a   : > { %v496_v24 = vpop.f32.mrf.mxu2 }
 0x15b   : > { %v497_v25 = vadd.f32 %v967_v7, %v496_v24 }
 0x15d   : > { %529 = vst.msk [vmem:[%s1216_s8 + $0x40] sm:$0xff] %vm520_vm2, %v497_v25 }
 0x162   : > { %v499_v26 = vpop.f32.mrf.mxu2 }
 0x163   : > { %v500_v27 = vadd.f32 %v967_v7, %v499_v26 }
 0x165   : > { %530 = vst.msk [vmem:[%s1216_s8 + $0x48] sm:$0xff] %vm520_vm2, %v500_v27 }
 0x16a   : > { %v502_v28 = vpop.f32.mrf.mxu2 }
 0x16b   : > { %v503_v29 = vadd.f32 %v967_v7, %v502_v28 }
 0x16d   : > { %531 = vst.msk [vmem:[%s1216_s8 + $0x50] sm:$0xff] %vm520_vm2, %v503_v29 }
 0x172   : > { %v505_v30 = vpop.f32.mrf.mxu2 }
 0x173   : > { %v506_v31 = vadd.f32 %v967_v7, %v505_v30 }
 0x175   : > { %532 = vst.msk [vmem:[%s1216_s8 + $0x58] sm:$0xff] %vm520_vm2, %v506_v31 }
 0x17a   : > { %v508_v32 = vpop.f32.mrf.mxu2 }
 0x17b   : > { %v509_v33 = vadd.f32 %v967_v7, %v508_v32 }
 0x17d   : > { %533 = vst.msk [vmem:[%s1216_s8 + $0x60] sm:$0xff] %vm520_vm2, %v509_v33 }
 0x182   : > { %v511_v34 = vpop.f32.mrf.mxu2 }
 0x183   : > { %v512_v35 = vadd.f32 %v967_v7, %v511_v34 }
 0x185   : > { %534 = vst.msk [vmem:[%s1216_s8 + $0x68] sm:$0xff] %vm520_vm2, %v512_v35 }
 0x18a   : > { %v514_v36 = vpop.f32.mrf.mxu2 }
 0x18b   : > { %v515_v37 = vadd.f32 %v967_v7, %v514_v36 }
 0x18d   : > { %535 = vst.msk [vmem:[%s1216_s8 + $0x70] sm:$0xff] %vm520_vm2, %v515_v37 }
 0x191   : > { %543 = sbr.rel (!%p1111_p4) target bundleno = 454 (0x1c6), region = 44 }
 0x192   : > { %v517_v38 = vpop.f32.mrf.mxu2 }
 0x193   : > { %v518_v39 = vadd.f32 %v967_v7, %v517_v38 }
 0x195   : > { %536 = vst.msk [vmem:[%s1216_s8 + $0x78] sm:$0xff] %vm520_vm2, %v518_v39 }
 0x196   : > { %s1370_s18 = smov (!%p546_p8, %s545_s18), 16 }
 0x197   : > { %s854_s13 = sshll.u32 %s1370_s18, 3 }
 0x198   : > { %p857_p9 = scmp.eq.s32.totalorder %s854_s13, 0 }
 0x199   : > { %s1263_s14 = sshrl.u32 (!%p857_p9), %s1370_s18, 4 }
 0x19a   : > { %554 = sbr.rel (%p857_p9) target bundleno = 454 (0x1c6), region = 48  ;;  %p858_p10 = scmp.le.s32.totalorder (!%p857_p9), %s1263_s14, 0 }
 0x19f   : > { %769 = sbr.rel (%p858_p10) target bundleno = 437 (0x1b5), region = 124  ;;  %s1361_s21 = smov (!%p858_p10), %s1257_s12 }
 0x1a0   : > { %s1362_s26 = smov (!%p858_p10), %s1216_s8  ;;  %s1272_s6 = smov (!%p858_p10), 0  }
 0x1a1   : > { %s1274_s15 = smov (!%p858_p10), 0  }
 0x1a4 LB: >> { %v647_v40 = vld [vmem:[%s1030_s26] sm:$0xff]  ;;  %v649_v41 = vld [vmem:[%s1030_s26 + $0x8] sm:$0xff]  ;;  %v651_v42 = vld [vmem:[%s1030_s26 + $0x10] sm:$0xff]  ;;  %s679_s16 = sadd.s32 1, %s1034_s6  ;;  %s641_s15 = sadd.s32 1, %s1038_s15   ;;  %s1038_s15 = sphi %s1274_s15, %s641_s15   ;;  %s1034_s6 = sphi %s1272_s6, %s1365_s6   ;;  %s1030_s26 = sphi %s1362_s26, %s1364_s26   ;;  %s1026_s21 = sphi %s1361_s21, %s1363_s21  }
 0x1a5   : >> { %648 = vst [vmem:[%s1026_s21] sm:$0xff] %v647_v40  ;;  %v653_v43 = vld [vmem:[%s1030_s26 + $0x18] sm:$0xff]  ;;  %p680_p11 = scmp.ge.s32.totalorder %s679_s16, %s1263_s14  ;;  %v655_v44 = vld [vmem:[%s1030_s26 + $0x20] sm:$0xff]  ;;  %v657_v45 = vld [vmem:[%s1030_s26 + $0x28] sm:$0xff]  ;;  %p640_p12 = scmp.ge.s32.totalorder %s641_s15, %s1263_s14 }
 0x1a6   : >> { %650 = vst [vmem:[%s1026_s21 + $0x8] sm:$0xff] %v649_v41  ;;  %v659_v46 = vld [vmem:[%s1030_s26 + $0x30] sm:$0xff]  ;;  %v661_v47 = vld [vmem:[%s1030_s26 + $0x38] sm:$0xff]  ;;  %v663_v48 = vld [vmem:[%s1030_s26 + $0x40] sm:$0xff] }
 0x1a7   : >> { %652 = vst [vmem:[%s1026_s21 + $0x10] sm:$0xff] %v651_v42  ;;  %s1372_s16 = smov (%p680_p11, %s679_s16), 0  ;;  %v665_v49 = vld [vmem:[%s1030_s26 + $0x48] sm:$0xff]  ;;  %v667_v50 = vld [vmem:[%s1030_s26 + $0x50] sm:$0xff]  ;;  %v669_v51 = vld [vmem:[%s1030_s26 + $0x58] sm:$0xff] }
 0x1a8   : >> { %654 = vst [vmem:[%s1026_s21 + $0x18] sm:$0xff] %v653_v43  ;;  %s859_s17 = sshll.u32 %s1372_s16, 7  ;;  %v671_v52 = vld [vmem:[%s1030_s26 + $0x60] sm:$0xff]  ;;  %v673_v53 = vld [vmem:[%s1030_s26 + $0x68] sm:$0xff]  ;;  %v675_v54 = vld [vmem:[%s1030_s26 + $0x70] sm:$0xff]  ;;  %s1365_s6 = smov %s1372_s16 }
 0x1a9   : >> { %656 = vst [vmem:[%s1026_s21 + $0x20] sm:$0xff] %v655_v44  ;;  %s684_s20 = scalar_lea.vmem %s1216_s8, %s859_s17 [#allocation2]   ;;  %s685_s23 = scalar_lea.vmem %s1257_s12, %s859_s17   ;;  %v677_v55 = vld [vmem:[%s1030_s26 + $0x78] sm:$0xff] }
 0x1aa   : >> { %658 = vst [vmem:[%s1026_s21 + $0x28] sm:$0xff] %v657_v45  ;;  %s1364_s26 = smov %s684_s20 }
 0x1ab   : >> { %660 = vst [vmem:[%s1026_s21 + $0x30] sm:$0xff] %v659_v46 }
 0x1ac   : >> { %662 = vst [vmem:[%s1026_s21 + $0x38] sm:$0xff] %v661_v47 }
 0x1ad   : >> { %664 = vst [vmem:[%s1026_s21 + $0x40] sm:$0xff] %v663_v48 }
 0x1ae   : >> { %666 = vst [vmem:[%s1026_s21 + $0x48] sm:$0xff] %v665_v49 }
 0x1af   : >> { %668 = vst [vmem:[%s1026_s21 + $0x50] sm:$0xff] %v667_v50 }
 0x1b0   : >> { %670 = vst [vmem:[%s1026_s21 + $0x58] sm:$0xff] %v669_v51  ;;  %643 = sbr.rel (!%p640_p12) target bundleno = 420 (0x1a4), region = 130 }
 0x1b1   : >> { %672 = vst [vmem:[%s1026_s21 + $0x60] sm:$0xff] %v671_v52 }
 0x1b2   : >> { %674 = vst [vmem:[%s1026_s21 + $0x68] sm:$0xff] %v673_v53 }
 0x1b3   : >> { %676 = vst [vmem:[%s1026_s21 + $0x70] sm:$0xff] %v675_v54 }
 0x1b4   : >> { %678 = vst [vmem:[%s1026_s21 + $0x78] sm:$0xff] %v677_v55  ;;  %s1363_s21 = smov %s685_s23 }
 0x1b5 PF: > { %s1336_s24 = sand.u32 15, %s1370_s18   ;;  %s870_s27 = sshll.u32 %s1263_s14, 7 }
 0x1b6   : > { %s690_s28 = scalar_lea.vmem %s1216_s8, %s870_s27 [#allocation2]   ;;  %s692_s29 = scalar_lea.vmem %s1257_s12, %s870_s27  }
 0x1b7   : > { %p864_p13 = scmp.le.s32.totalorder %s1336_s24, 0 }
 0x1b8   : > { %s1040_s30 = smov (!%p864_p13), %s692_s29   ;;  %s1044_s7 = smov (!%p864_p13), %s690_s28  }
 0x1b9   : > { %783 = sbr.rel (%p864_p13) target bundleno = 454 (0x1c6), region = 135  ;;  %s1048_s9 = smov (!%p864_p13), 0  }
 0x1ba   : > { %s1052_s10 = smov (!%p864_p13), 0  }
 0x1be LB: >> { %v702_v56 = vld [vmem:[%s1046_s7] sm:$0xff]  ;;  %s704_s18 = sadd.s32 1, %s1050_s9  ;;  %s696_s10 = sadd.s32 1, %s1054_s10   ;;  %s1054_s10 = sphi %s1052_s10, %s696_s10   ;;  %s1050_s9 = sphi %s1048_s9, %s1049_s9   ;;  %s1046_s7 = sphi %s1044_s7, %s709_s7   ;;  %s1042_s30 = sphi %s1040_s30, %s710_s30  }
 0x1bf   : >> { %703 = vst [vmem:[%s1042_s30] sm:$0xff] %v702_v56  ;;  %p705_p0 = scmp.ge.s32.totalorder %s704_s18, %s1336_s24  ;;  %p695_p1 = scmp.ge.s32.totalorder %s696_s10, %s1336_s24 }
 0x1c1   : >> { %s1374_s18 = smov (%p705_p0, %s704_s18), 0  ;;  %698 = sbr.rel (!%p695_p1) target bundleno = 446 (0x1be), region = 141 }
 0x1c2   : >> { %s865_s8 = sshll.u32 %s1374_s18, 3  ;;  %s1049_s9 = smov %s1374_s18  }
 0x1c3   : >> { %s709_s7 = scalar_lea.vmem %s690_s28, %s865_s8 [#allocation2]   ;;  %s710_s30 = scalar_lea.vmem %s692_s29, %s865_s8  }
 0x1c6 PF: > { %p12_p2 = scmp.ge.s32.totalorder %s1101_s22, 5   ;;  %s1366_s18 = smov %s1018_s19 }
 0x1c7   : > { %s1367_s19 = smov %s1109_s25  ;;  %s1368_s20 = smov %s1101_s22 }
 0x1c8   :  { %14 = sbr.rel (!%p12_p2) target bundleno = 2 (0x2), region = 152 }

</bundles_post_ra>
